<compile_context>
chip_gen: v5e
topology: v5e:2x2
jax: 0.10.0
libtpu: 0.0.40
codegen_flags: <defaults>
</compile_context>

<pallas_src>
import functools

import numpy as np
import jax
import jax.numpy as jnp
from jax import lax
from jax.experimental import pallas as pl
from jax.experimental.pallas import tpu as pltpu

LOSS_WEIGHT = 1.0
SCALE = 10.0 / np.log(10.0)
EPS = 1e-8

_LANE = 128
_N_CHUNKS = 2  # leading 'parallel' grid axis: feeds both v7x TensorCores


def _round_up(x, m):
    return (x + m - 1) // m * m


def _cdiv(a, b):
    return (a + b - 1) // b


def _vmem_capacity_bytes():
    try:
        return int(pltpu.get_tpu_info().vmem_capacity_bytes)
    except Exception:
        return 64 * 1024 * 1024  # conservative (v7x-sized) fallback


def _sublane_rows(batch, dtype):
    # VMEM sublane rows occupied by `batch` rows of this dtype (packing-aware).
    pack = max(1, 4 // jnp.dtype(dtype).itemsize)
    return _round_up(batch, 8 * pack)


def _psnr_sumsq_kernel(pred_ref, target_ref, out_ref, *,
                       n_valid, tile_cols, tiles_per_chunk):
    c = pl.program_id(0)            # column chunk      (parallel)
    t = pl.program_id(1)            # tile within chunk (reduction)
    nt = pl.num_programs(1)

    # Output block (1, B, 1) is resident across the reduction axis: use it
    # directly as the f32 accumulator.
    @pl.when(t == 0)
    def _init():
        out_ref[...] = jnp.zeros_like(out_ref)

    diff = pred_ref[...].astype(jnp.float32) - target_ref[...].astype(jnp.float32)
    sq = diff * diff                                     # (B, tile_cols)

    # Un-clamped global column offset of this grid step. The index_map clamps
    # the DMA'd block index, but col_start keeps the true offset so both the
    # ragged last tile and the (at most one) duplicated padding step get
    # masked out. Out-of-bounds VMEM contents are garbage -> mask is mandatory.
    col_start = (c * tiles_per_chunk + t) * tile_cols
    fully_valid = col_start + tile_cols <= n_valid

    @pl.when(fully_valid)
    def _acc_full():   # common path: no masking cost
        out_ref[...] += jnp.sum(sq, axis=1, keepdims=True)[None]

    @pl.when(jnp.logical_not(fully_valid))
    def _acc_masked():  # ragged tail / duplicated step
        col = lax.broadcasted_iota(jnp.int32, sq.shape, 1)
        valid = col < (n_valid - col_start)              # all-False if duplicated
        out_ref[...] += jnp.sum(jnp.where(valid, sq, 0.0), axis=1, keepdims=True)[None]


def psnr_loss(pred: jax.Array, target: jax.Array, *,
              loss_weight: float = LOSS_WEIGHT,
              max_tile_cols: int | None = None) -> jax.Array:
    """Pallas implementation of PSNRLoss(toY=False). Inputs: NCHW (f32/bf16)."""
    assert pred.ndim == 4 and pred.shape == target.shape
    B, C, H, W = pred.shape
    n = C * H * W

    # Free views -- no padding, no HBM copies.
    pred2 = pred.reshape(B, n)
    target2 = target.reshape(B, n)

    # ---- generation-aware tile sizing --------------------------------------
    vmem_cap = _vmem_capacity_bytes()
    # Budget for 2 inputs x 2 pipeline buffers: ~1/4 of physical VMEM
    # (16 MiB on v7x, 32 MiB on v5e/v6e); rest is headroom for intermediates.
    buf_budget = min(vmem_cap // 4, 32 * 1024 * 1024)

    itemsize = jnp.dtype(pred.dtype).itemsize
    b_sub = _sublane_rows(B, pred.dtype)                 # VMEM rows per block
    per_col_bytes = b_sub * itemsize
    max_cols = max(_LANE, (buf_budget // (4 * per_col_bytes)) // _LANE * _LANE)

    # Cap at ~half the columns so there are >=2 tiles (when data allows) and
    # the leading 'parallel' axis can feed both v7x TensorCores.
    half_cols = max(_LANE, _round_up(_cdiv(n, _N_CHUNKS), _LANE))
    tile_cols = min(max_cols, half_cols)
    if max_tile_cols is not None:                        # testing knob
        tile_cols = min(tile_cols, _round_up(max_tile_cols, _LANE))
    tile_cols = max(_LANE, tile_cols // _LANE * _LANE)

    total_tiles = _cdiv(n, tile_cols)
    n_chunks = min(_N_CHUNKS, total_tiles)
    tiles_per_chunk = _cdiv(total_tiles, n_chunks)
    last_tile = total_tiles - 1

    # Raise scoped VMEM above the buffers with generous headroom, but never
    # above physical capacity (64 MiB on v7x).
    buf_bytes = 4 * b_sub * tile_cols * itemsize
    vmem_limit = int(min(vmem_cap, max(32 << 20, 2 * buf_bytes + (16 << 20))))

    if n_chunks * tiles_per_chunk > total_tiles:
        # At most one grid step lies past the data: clamp it onto the last
        # tile (its contribution is masked to zero inside the kernel).
        def in_map(c, t):
            return (0, jnp.minimum(c * tiles_per_chunk + t, last_tile))
    else:
        def in_map(c, t):
            return (0, c * tiles_per_chunk + t)

    kernel = functools.partial(
        _psnr_sumsq_kernel,
        n_valid=n, tile_cols=tile_cols, tiles_per_chunk=tiles_per_chunk)

    partials = pl.pallas_call(
        kernel,
        out_shape=jax.ShapeDtypeStruct((n_chunks, B, 1), jnp.float32),
        grid_spec=pltpu.PrefetchScalarGridSpec(
            num_scalar_prefetch=0,
            grid=(n_chunks, tiles_per_chunk),
            in_specs=[
                pl.BlockSpec((B, tile_cols), in_map),
                pl.BlockSpec((B, tile_cols), in_map),
            ],
            out_specs=pl.BlockSpec((1, B, 1), lambda c, t: (c, 0, 0)),
        ),
        compiler_params=pltpu.CompilerParams(
            dimension_semantics=("parallel", "arbitrary"),
            vmem_limit_bytes=vmem_limit,
        ),
    )(pred2, target2)

    # Tiny wrapper-side epilogue: combine chunk partials, then log/mean.
    sum_sq = jnp.sum(partials[:, :, 0], axis=0)          # (B,)
    mse = sum_sq / np.float32(n)
    return loss_weight * SCALE * jnp.mean(jnp.log(mse + EPS))


def psnr_loss_ref(pred, target, loss_weight=LOSS_WEIGHT):
    # pure-JAX reference (matches the PyTorch forward, toY=False)
    diff = pred.astype(jnp.float32) - target.astype(jnp.float32)
    mse = jnp.mean(diff * diff, axis=(1, 2, 3))
    return loss_weight * SCALE * jnp.mean(jnp.log(mse + EPS))


if __name__ == "__main__":
    key = jax.random.PRNGKey(0)
    k1, k2 = jax.random.split(key)

    # 1) Lane-aligned element count (n = 4*16*16 = 1024).
    B, C, H, W = 2, 4, 16, 16
    pred = jax.random.uniform(k1, (B, C, H, W), dtype=jnp.float32)
    target = jax.random.uniform(k2, (B, C, H, W), dtype=jnp.float32)
    loss = psnr_loss(pred, target)
    jax.block_until_ready(loss)
    np.testing.assert_allclose(
        np.asarray(loss), np.asarray(psnr_loss_ref(pred, target)), rtol=1e-5, atol=1e-5)

    # 2) Misaligned element count (n = 3*7*9 = 189): exercises the in-kernel
    #    ragged-tail mask (no wrapper-side padding anywhere).
    k3, k4 = jax.random.split(k1)
    pred2 = jax.random.uniform(k3, (3, 3, 7, 9), dtype=jnp.float32)
    target2 = jax.random.uniform(k4, (3, 3, 7, 9), dtype=jnp.float32)
    loss2 = psnr_loss(pred2, target2)
    jax.block_until_ready(loss2)
    np.testing.assert_allclose(
        np.asarray(loss2), np.asarray(psnr_loss_ref(pred2, target2)), rtol=1e-5, atol=1e-5)

    # 3) Odd tile count + B=1: exercises the clamped duplicate grid step and
    #    the uneven 2-chunk split (max_tile_cols forces 3 tiles of 128 cols).
    k5, k6 = jax.random.split(k2)
    pred3 = jax.random.uniform(k5, (1, 3, 10, 11), dtype=jnp.float32)
    target3 = jax.random.uniform(k6, (1, 3, 10, 11), dtype=jnp.float32)
    loss3 = psnr_loss(pred3, target3, max_tile_cols=128)
    jax.block_until_ready(loss3)
    np.testing.assert_allclose(
        np.asarray(loss3), np.asarray(psnr_loss_ref(pred3, target3)), rtol=1e-5, atol=1e-5)

    print("KERNEL_OK")
</pallas_src>

<mosaic_0001>
module attributes {stable_mosaic.version = 11 : i64} {
  func.func @_psnr_sumsq_kernel(%arg0: i32, %arg1: i32, %arg2: memref<2x512xf32, #tpu.memory_space<vmem>>, %arg3: memref<2x512xf32, #tpu.memory_space<vmem>>, %arg4: memref<1x2x1xf32, #tpu.memory_space<vmem>>) attributes {dimension_semantics = [#tpu.dimension_semantics<parallel>, #tpu.dimension_semantics<arbitrary>], iteration_bounds = array<i64: 2, 1>, scalar_prefetch = 0 : i64, scratch_operands = 0 : i64, tpu.core_type = #tpu.core_type<tc>, window_params = [{transform_indices = @transform_0, window_bounds = array<i64: 2, 512>}, {transform_indices = @transform_1, window_bounds = array<i64: 2, 512>}, {transform_indices = @transform_2, window_bounds = array<i64: 1, 2, 1>}]} {
    %c0_i32 = arith.constant 0 : i32
    %0 = arith.cmpi eq, %arg1, %c0_i32 : i32
    %1 = arith.extui %0 : i1 to i32
    %c0_i32_0 = arith.constant 0 : i32
    %2 = arith.cmpi ne, %1, %c0_i32_0 : i32
    scf.if %2 {
      %cst = arith.constant 0.000000e+00 : f32
      %17 = vector.broadcast %cst : f32 to vector<1x2x1xf32>
      %c0_7 = arith.constant 0 : index
      %c0_8 = arith.constant 0 : index
      %c0_9 = arith.constant 0 : index
      %18 = vector.load %arg4[%c0_7, %c0_8, %c0_9] : memref<1x2x1xf32, #tpu.memory_space<vmem>>, vector<1x2x1xf32>
      tpu.vector_store %arg4[%c0_7, %c0_8, %c0_9], %17 {strides = array<i32>} : memref<1x2x1xf32, #tpu.memory_space<vmem>>, vector<1x2x1xf32>,
    } else {
    }
    %c0 = arith.constant 0 : index
    %c0_1 = arith.constant 0 : index
    %3 = vector.load %arg2[%c0, %c0_1] : memref<2x512xf32, #tpu.memory_space<vmem>>, vector<2x512xf32>
    %c0_2 = arith.constant 0 : index
    %c0_3 = arith.constant 0 : index
    %4 = vector.load %arg3[%c0_2, %c0_3] : memref<2x512xf32, #tpu.memory_space<vmem>>, vector<2x512xf32>
    %5 = arith.subf %3, %4 : vector<2x512xf32>
    %6 = arith.mulf %5, %5 : vector<2x512xf32>
    %c1_i32 = arith.constant 1 : i32
    %7 = arith.muli %arg0, %c1_i32 : i32
    %8 = arith.addi %7, %arg1 : i32
    %c512_i32 = arith.constant 512 : i32
    %9 = arith.muli %8, %c512_i32 : i32
    %c512_i32_4 = arith.constant 512 : i32
    %10 = arith.addi %9, %c512_i32_4 : i32
    %c1024_i32 = arith.constant 1024 : i32
    %11 = arith.cmpi sle, %10, %c1024_i32 : i32
    %12 = arith.extui %11 : i1 to i32
    %c0_i32_5 = arith.constant 0 : i32
    %13 = arith.cmpi ne, %12, %c0_i32_5 : i32
    scf.if %13 {
      %c0_7 = arith.constant 0 : index
      %c0_8 = arith.constant 0 : index
      %c0_9 = arith.constant 0 : index
      %17 = vector.load %arg4[%c0_7, %c0_8, %c0_9] : memref<1x2x1xf32, #tpu.memory_space<vmem>>, vector<1x2x1xf32>
      %cst = arith.constant dense<0.000000e+00> : vector<2xf32>
      %18 = vector.multi_reduction <add>, %6, %cst [1] : vector<2x512xf32> to vector<2xf32>
      %19 = vector.shape_cast %18 : vector<2xf32> to vector<2x1xf32>
      %20 = vector.shape_cast %19 : vector<2x1xf32> to vector<1x2x1xf32>
      %21 = arith.addf %17, %20 : vector<1x2x1xf32>
      %c0_10 = arith.constant 0 : index
      %c0_11 = arith.constant 0 : index
      %c0_12 = arith.constant 0 : index
      %22 = vector.load %arg4[%c0_10, %c0_11, %c0_12] : memref<1x2x1xf32, #tpu.memory_space<vmem>>, vector<1x2x1xf32>
      tpu.vector_store %arg4[%c0_10, %c0_11, %c0_12], %21 {strides = array<i32>} : memref<1x2x1xf32, #tpu.memory_space<vmem>>, vector<1x2x1xf32>,
    } else {
    }
    %true = arith.constant true
    %14 = arith.xori %11, %true : i1
    %15 = arith.extui %14 : i1 to i32
    %c0_i32_6 = arith.constant 0 : i32
    %16 = arith.cmpi ne, %15, %c0_i32_6 : i32
    scf.if %16 {
      %17 = tpu.iota {dimensions = array<i32: 1>} : vector<2x512xi32>
      %c1024_i32_7 = arith.constant 1024 : i32
      %18 = arith.subi %c1024_i32_7, %9 : i32
      %19 = vector.broadcast %18 : i32 to vector<2x512xi32>
      %20 = arith.cmpi slt, %17, %19 : vector<2x512xi32>
      %c0_8 = arith.constant 0 : index
      %c0_9 = arith.constant 0 : index
      %c0_10 = arith.constant 0 : index
      %21 = vector.load %arg4[%c0_8, %c0_9, %c0_10] : memref<1x2x1xf32, #tpu.memory_space<vmem>>, vector<1x2x1xf32>
      %cst = arith.constant 0.000000e+00 : f32
      %22 = vector.broadcast %cst : f32 to vector<2x512xf32>
      %23 = arith.select %20, %6, %22 : vector<2x512xi1>, vector<2x512xf32>
      %cst_11 = arith.constant dense<0.000000e+00> : vector<2xf32>
      %24 = vector.multi_reduction <add>, %23, %cst_11 [1] : vector<2x512xf32> to vector<2xf32>
      %25 = vector.shape_cast %24 : vector<2xf32> to vector<2x1xf32>
      %26 = vector.shape_cast %25 : vector<2x1xf32> to vector<1x2x1xf32>
      %27 = arith.addf %21, %26 : vector<1x2x1xf32>
      %c0_12 = arith.constant 0 : index
      %c0_13 = arith.constant 0 : index
      %c0_14 = arith.constant 0 : index
      %28 = vector.load %arg4[%c0_12, %c0_13, %c0_14] : memref<1x2x1xf32, #tpu.memory_space<vmem>>, vector<1x2x1xf32>
      tpu.vector_store %arg4[%c0_12, %c0_13, %c0_14], %27 {strides = array<i32>} : memref<1x2x1xf32, #tpu.memory_space<vmem>>, vector<1x2x1xf32>,
    } else {
    }
    return
  }
  func.func @transform_0(%arg0: i32, %arg1: i32) -> (i32, i32) {
    %c1_i32 = arith.constant 1 : i32
    %0 = arith.muli %arg0, %c1_i32 : i32
    %1 = arith.addi %0, %arg1 : i32
    %c0_i32 = arith.constant 0 : i32
    %c0_i32_0 = arith.constant 0 : i32
    return %c0_i32, %1 : i32, i32
  }
  func.func @transform_1(%arg0: i32, %arg1: i32) -> (i32, i32) {
    %c1_i32 = arith.constant 1 : i32
    %0 = arith.muli %arg0, %c1_i32 : i32
    %1 = arith.addi %0, %arg1 : i32
    %c0_i32 = arith.constant 0 : i32
    %c0_i32_0 = arith.constant 0 : i32
    return %c0_i32, %1 : i32, i32
  }
  func.func @transform_2(%arg0: i32, %arg1: i32) -> (i32, i32, i32) {
    %c0_i32 = arith.constant 0 : i32
    %c0_i32_0 = arith.constant 0 : i32
    %c0_i32_1 = arith.constant 0 : i32
    return %arg0, %c0_i32, %c0_i32_0 : i32, i32, i32
  }
}

</mosaic_0001>

<bundles_post_ra>
// kernel: tpu_custom_call.1
= control target key start
LH: loop header
LB: loop body
LE: loop exit
PB: predicated region body
PF: predicated region fallthrough
CT: control target
= control target key end

     0   :  { %7 = vsyncpa [#allocation3], 0  ;;  %s738_s0 = inlined_call_operand.hbm [shape: f32[2,1024], index: 0, kind: input, shape index: {}]   ;;  %s739_s1 = inlined_call_operand.hbm [shape: f32[2,1024], index: 1, kind: input, shape index: {}]   ;;  %s740_s2 = inlined_call_operand.vmem [shape: f32[2,2,1], index: 2, kind: output, shape index: {}]  }
   0x1   :  { %9 = vsyncpa [#allocation3 + $0x1], 0 }
   0x2   :  { %10 = vsyncpa [#allocation5], 0 }
   0x3   :  { %12 = vsyncpa [#allocation5 + $0x1], 0  ;;  %s620_s9 = smov 0   ;;  %s622_s10 = smov 0  }
   0x4   :  { %s624_s11 = smov 0   ;;  %s626_s12 = smov 0  }
   0x5   :  { %s628_s13 = smov 0   ;;  %s630_s14 = smov 0  }
   0x6 LB: > { %s406_s15 = sadd.s32 4294967295, %s602_s14   ;;  %s30_s16 = sadd.s32 1, %s598_s13  ;;  %s602_s14 = sphi %s630_s14, %s18_s14   ;;  %s598_s13 = sphi %s628_s13, %s747_s13   ;;  %s594_s12 = sphi %s626_s12, %s746_s12   ;;  %s590_s11 = sphi %s624_s11, %s745_s11   ;;  %s586_s10 = sphi %s622_s10, %s744_s10   ;;  %s582_s9 = sphi %s620_s9, %s743_s9  }
   0x7   : > { %p32_p0 = scmp.ge.s32.totalorder %s30_s16, 2  ;;  %s39_s17 = sadd.s32 1, %s590_s11 }
   0x8   : > { %p46_p1 = scmp.ne.s32.totalorder %s590_s11, %s586_s10  ;;  %p47_p2 = scmp.eq.s32.totalorder %s602_s14, 0 }
   0x9   : > { %s749_s16 = smov (%p32_p0, %s30_s16), 0  ;;  %p52_p4 = scmp.ne.s32.totalorder %s586_s10, %s582_s9 }
   0xa   : > { %p656_p3 = por %p47_p2, %p46_p1  ;;  %s36_s19 = ssub.s32 %s598_s13, %s749_s16 }
   0xb   : > { %p53_p5 = scmp.eq.s32.totalorder %s406_s15, 0  ;;  %p37_p6 = scmp.eq.s32.totalorder %s36_s19, 0 }
   0xc   : > { %p438_p8 = scmp.lt.s32.totalorder %s602_s14, 2  ;;  %s130_s22 = sand.u32 1, %s590_s11  }
   0xd   : > { %p663_p7 = por %p53_p5, %p52_p4  ;;  %s425_s23 = sshll.u32 %s598_s13, 3 }
   0xe   : > { %s669_s21 = scalar_select %p37_p6, %s590_s11, %s39_s17  }
   0xf   : > { %s410_s24 = sshll.u32 %s130_s22, 3  ;;  %s140_s27 = scalar_lea.hbm %s738_s0, %s425_s23 }
  0x10   : > { %s142_s28 = sshll.u32 %s140_s27, 4  ;;  %s134_s29 = scalar_lea.vmem [#allocation2], %s410_s24  ;;  %s143_s28 = int_to_ptr.hbm [resolvable:$true] %s142_s28 }
  0x11   : > { %s144_s30 = sshll.u32 %s134_s29, 4  ;;  %p432_p9 = pnand %p438_p8, %p656_p3  ;;  %s145_s30 = int_to_ptr.vmem [resolvable:$true] %s144_s30 }
  0x12   : > { %p416_p10 = scmp.ge.s32.totalorder %s602_s14, 1  ;;  %p170_p11 = scmp.lt.s32.totalorder %s602_s14, 3 }
  0x13   : > { %s131_s3 = scalar_lea.sflag [#allocation3], %s130_s22  ;;  %s161_s6 = scalar_lea.hbm %s739_s1, %s425_s23 }
  0x14   : > { %434 = dma.hbm_to_vmem [thread:$0]  (!%p432_p9), %s143_s28, 128, %s145_s30, %s131_s3  }
  0x15   : > { %p171_p12 = pnand %p416_p10, %p170_p11  ;;  %s163_s7 = sshll.u32 %s161_s6, 4  ;;  %s164_s7 = int_to_ptr.hbm [resolvable:$true] %s163_s7 }
  0x16   : > { %s155_s8 = scalar_lea.vmem [#allocation4], %s410_s24  ;;  %s152_s15 = scalar_lea.sflag [#allocation5], %s130_s22 }
  0x17   : > { %s165_s9 = sshll.u32 %s155_s8, 4  ;;  %174 = sbr.rel (%p171_p12) target bundleno = 319 (0x13f), region = 28  ;;  %s166_s9 = int_to_ptr.vmem [resolvable:$true] %s165_s9 }
  0x18   : > { %437 = dma.hbm_to_vmem [thread:$0]  (!%p432_p9), %s164_s7, 128, %s166_s9, %s152_s15  }
  0x19   : > { %s176_s17 = sand.u32 (!%p171_p12), 1, %s586_s10  }
  0x1a   : > { %s417_s18 = sshll.u32 (!%p171_p12), %s176_s17, 3  ;;  %s177_s19 = scalar_lea.sflag (!%p171_p12), [#allocation3], %s176_s17 }
  0x1b   : > { %s180_s25 = scalar_lea.vmem (!%p171_p12), [#allocation2], %s417_s18 }
  0x1c   : > { %573 = dma.done.wait (%p663_p7), %s177_s19, 128  }
  0x1d   : > { %575 = vsyncadd (%p663_p7), %s177_s19, 4294967168  ;;  %s187_s23 = scalar_lea.sflag [#allocation5], %s176_s17  ;;  %s190_s24 = scalar_lea.vmem [#allocation4], %s417_s18 }
  0x1e   : > { %577 = dma.done.wait (%p663_p7), %s187_s23, 128  }
  0x1f   : > { %579 = vsyncadd (%p663_p7), %s187_s23, 4294967168  ;;  %p220_p13 = scmp.lt.s32.totalorder %s594_s12, 1  ;;  %s420_s22 = sshll.u32 %s594_s12, 9  ;;  %vm228_vm0 = vcmask 1024   ;;  %v604_v0 = vmov 0.0   ;;  %v230_v1 = vld [vmem:[%s180_s25] sm:$0xff] }
  0x20   : > { %s696_s26 = sadd.s32 512, %s420_s22  ;;  %v231_v2 = vld [vmem:[%s190_s24] sm:$0xff] }
  0x21   : > { %s221_s27 = scalar_select %p220_p13, %s594_s12, 1  ;;  %v232_v3 = vsub.f32 %v230_v1, %v231_v2 }
  0x22   : > { %p421_p0 = scmp.gt.s32.totalorder %s696_s26, 1024 }
  0x23   : > { %s419_s28 = sshll.u32 %s221_s27, 1  ;;  %v233_v4 = vmul.f32 %v232_v3, %v232_v3 }
  0x24   : > { %s702_s3 = scalar_lea.vmem %s740_s2, %s419_s28  ;;  %240 = sbr.rel (%p421_p0) target bundleno = 176 (0xb0), region = 44 }
  0x25   : > { %229 = vst.msk [vmem:[%s702_s3] sm:$0x3] %vm228_vm0, %v604_v0 }
  0x29   : > { %243 = vst [vmem:[#allocation1] ss:$4 sm:$0xff] %v233_v4  ;;  %vm252_vm1 = vcmask 1041408  }
  0x2c   : > { %v241_v16 = vld [vmem:[%s702_s3] sm:$0x3] }
  0x30   : > { %v244_v5 = vld.sshfl [vmem:[#allocation1] sm:$0xff pattern:$0x73625140]  ;;  %v245_v6 = vld.sshfl [vmem:[#allocation1 + $0x8] sm:$0xff pattern:$0x73625140] }
  0x31   : > { %v246_v7 = vld.sshfl [vmem:[#allocation1 + $0x10] sm:$0xff pattern:$0x73625140]  ;;  %v247_v8 = vld.sshfl [vmem:[#allocation1 + $0x18] sm:$0xff pattern:$0x73625140] }
  0x32   : > { %v253_v9 = vsel %vm252_vm1, %v244_v5, 0.0  ;;  %v254_v10 = vsel %vm252_vm1, %v245_v6, 0.0  ;;  %v256_v11 = vsel %vm252_vm1, %v246_v7, 0.0  ;;  %v258_v13 = vsel %vm252_vm1, %v247_v8, 0.0 }
  0x33   : > { %v255_v12 = vadd.f32 %v254_v10, %v253_v9 }
  0x35   : > { %v257_v14 = vadd.f32 %v256_v11, %v255_v12 }
  0x37   : > { %v259_v15 = vadd.f32 %v258_v13, %v257_v14 }
  0x39   : > { %260 = vadd.xlane.f32.xlu0 %v259_v15 }
  0xac   : > { %v261_v17 = vpop.xlane.xlu0 %260 }
  0xad   : > { %v262_v18 = vadd.f32 %v261_v17, %v241_v16 }
  0xaf   : > { %264 = vst.msk [vmem:[%s702_s3] sm:$0x3] %vm228_vm0, %v262_v18 }
  0xb0 PF: > { %p422_p1 = scmp.le.s32.totalorder %s696_s26, 1024 }
  0xb1   : > { %s274_s20 = ssub.s32 (!%p422_p1), 1024, %s420_s22 }
  0xb2   : > { %268 = sbr.rel (%p422_p1) target bundleno = 319 (0x13f), region = 48 }
  0xb7   : > { %v269_v19 = vlaneseq  ;;  %282 = vst [vmem:[#allocation1] ss:$4 sm:$0xff] %v233_v4  ;;  %v275_v21 = vstv %s274_s20  ;;  %vm295_vm2 = vcmask 1041408   ;;  %v280_v40 = vld [vmem:[%s702_s3] sm:$0x3] }
  0xb9   : > { %v270_v20 = vand.u32 127, %v269_v19 }
  0xbb   : > { %v271_v22 = vadd.s32 128, %v270_v20  ;;  %v272_v23 = vadd.s32 256, %v270_v20  ;;  %v273_v24 = vadd.s32 384, %v270_v20  ;;  %vm276_vm3 = vcmp.lt.s32.totalorder %v270_v20, %v275_v21 }
  0xbd   : > { %vm277_vm4 = vcmp.lt.s32.totalorder %v271_v22, %v275_v21  ;;  %vm278_vm5 = vcmp.lt.s32.totalorder %v272_v23, %v275_v21  ;;  %vm279_vm6 = vcmp.lt.s32.totalorder %v273_v24, %v275_v21 }
  0xbe   : > { %v283_v25 = vld.sshfl [vmem:[#allocation1] sm:$0xff pattern:$0x73625140]  ;;  %v284_v26 = vld.sshfl [vmem:[#allocation1 + $0x8] sm:$0xff pattern:$0x73625140] }
  0xbf   : > { %v285_v27 = vld.sshfl [vmem:[#allocation1 + $0x10] sm:$0xff pattern:$0x73625140]  ;;  %v286_v28 = vld.sshfl [vmem:[#allocation1 + $0x18] sm:$0xff pattern:$0x73625140] }
  0xc0   : > { %v291_v29 = vsel %vm276_vm3, %v283_v25, 0.0  ;;  %v292_v30 = vsel %vm277_vm4, %v284_v26, 0.0  ;;  %v293_v31 = vsel %vm278_vm5, %v285_v27, 0.0  ;;  %v294_v32 = vsel %vm279_vm6, %v286_v28, 0.0 }
  0xc1   : > { %v296_v33 = vsel %vm295_vm2, %v291_v29, 0.0  ;;  %v297_v34 = vsel %vm295_vm2, %v292_v30, 0.0  ;;  %v299_v35 = vsel %vm295_vm2, %v293_v31, 0.0  ;;  %v301_v37 = vsel %vm295_vm2, %v294_v32, 0.0 }
  0xc2   : > { %v298_v36 = vadd.f32 %v297_v34, %v296_v33 }
  0xc4   : > { %v300_v38 = vadd.f32 %v299_v35, %v298_v36 }
  0xc6   : > { %v302_v39 = vadd.f32 %v301_v37, %v300_v38 }
  0xc8   : > { %303 = vadd.xlane.f32.xlu0 %v302_v39 }
 0x13b   : > { %v304_v41 = vpop.xlane.xlu0 %303 }
 0x13c   : > { %v305_v42 = vadd.f32 %v304_v41, %v280_v40 }
 0x13e   : > { %307 = vst.msk [vmem:[%s702_s3] sm:$0x3] %vm228_vm0, %v305_v42 }
 0x13f PF: > { %s18_s14 = sadd.s32 1, %s602_s14   ;;  %s743_s9 = smov %s586_s10 }
 0x140   : > { %p15_p2 = scmp.ge.s32.totalorder %s18_s14, 4   ;;  %s744_s10 = smov %s590_s11 }
 0x141   : > { %s745_s11 = smov %s669_s21  ;;  %s746_s12 = smov %s598_s13 }
 0x142   : > { %s747_s13 = smov %s749_s16  ;;  %17 = sbr.rel (!%p15_p2) target bundleno = 6 (0x6), region = 93 }
 0x147   :  { %327 = vsyncpa [#allocation3], 1 }
 0x148   :  { %329 = vsyncpa [#allocation3 + $0x1], 1 }
 0x149   :  { %330 = vsyncpa [#allocation5], 1 }
 0x14a   :  { %332 = vsyncpa [#allocation5 + $0x1], 1 }

</bundles_post_ra>
